<compile_context>
chip_gen: v6e
topology: v6e:2x2x1
jax: 0.10.0
libtpu: 0.0.40
codegen_flags: <defaults>
</compile_context>

<pallas_src>
import functools
import math

import jax
import jax.numpy as jnp
import numpy as np
from jax.experimental import pallas as pl
from jax.experimental.pallas import tpu as pltpu

BOARDER_WEIGHT = 1e10
EPS = 1e-10
LOG_EPS = math.log(EPS)   # ~ -23.0258509


def _round_up(x, m):
    return (x + m - 1) // m * m


def _pick_tile_n(n_rays, lp):
    """Largest ray tile whose double-buffered streams fit a conservative VMEM budget.

    ~24 B/ray-sample streamed (20 B in + 4 B weights out), x2 for the default
    double buffering -> stays well under v5e's 16 MiB default scoped VMEM and
    v7x's 64 MiB physical VMEM, while big enough to amortize the ~0.35us/step
    grid overhead on v6e.
    """
    budget = 8 * 1024 * 1024
    per_ray = 2 * 24 * lp
    t = budget // per_ray
    t = max(8, min(1024, (t // 8) * 8))
    return min(t, n_rays) if n_rays >= 8 else n_rays


def _volume_render_kernel(depth_ref, sigma_ref, rgb_ref, norm_ref, mask_ref,
                          color_ref, depth_out_ref, acc_ref, w_ref, *, l_last):
    depth = depth_ref[...]                                    # [T, Lp]
    sigma = sigma_ref[...]                                    # [T, Lp]
    norm = norm_ref[...]                                      # [T, 1]
    t, lp = depth.shape

    # delta_i = depth_{i+1} - depth_i ; the last *real* sample (lane l_last)
    # gets the boarder weight; zero-padded tail lanes keep delta = 0.
    d_next = jnp.concatenate([depth[:, 1:], depth[:, lp - 1:lp]], axis=-1)
    lane = jax.lax.broadcasted_iota(jnp.int32, (t, lp), 1)
    delta = jnp.where(lane == l_last, BOARDER_WEIGHT, d_next - depth) * norm

    # alpha / transmittance with a single exp per element (no log):
    #   neg = -relu(sigma) * delta  (<= 0)
    #   alpha = 1 - exp(neg)
    #   log(1 - alpha + EPS) = log(exp(neg) + EPS) ~= max(neg, log(EPS))
    neg = -jnp.maximum(sigma, 0.0) * delta
    alpha = 1.0 - jnp.exp(neg)
    log_trans = jnp.maximum(neg, LOG_EPS)

    # Exclusive cumprod over samples as an exclusive log-space cumsum on the
    # (otherwise idle) MXU.  mask[j, i] = 1 iff j < i, VMEM-resident input.
    # HIGHEST precision => full-f32 passes, so log-space quantization is not
    # amplified by the exp() below.
    log_t = jnp.dot(log_trans, mask_ref[...],
                    precision=jax.lax.Precision.HIGHEST,
                    preferred_element_type=jnp.float32)       # [T, Lp]
    weights = alpha * jnp.exp(log_t)                          # [T, Lp]

    w_ref[...] = weights                                      # lane-dense store
    acc_ref[...] = jnp.sum(weights, axis=-1, keepdims=True)
    depth_out_ref[...] = jnp.sum(weights * depth, axis=-1, keepdims=True)

    # rgb is channel-major [3, T, Lp] -> each channel's sigmoid is lane-dense.
    for c in range(3):
        col = jnp.sum(jax.nn.sigmoid(rgb_ref[c]) * weights, axis=-1,
                      keepdims=True)                          # [T, 1]
        color_ref[:, c:c + 1] = col


def volume_renderer(depth, rgb, sigma, rays_norm, noise=0.0, use_mask=False,
                    rgb_channel_major=False, tile_n=None):
    """JAX/Pallas equivalent of VolumeRenderer.forward.

    depth: [N, L, 1]; sigma: [N, L, 1]; rays_norm: [N, 1] (or [N]).
    rgb:   [N, L, 3]  (PyTorch layout), or [3, N, L] with
           rgb_channel_major=True to skip the wrapper-side transpose pass.
    returns (color [N,3], depth [N,1], acc_map [N,1], weights [N,L,1])
    """
    if noise > 0.0:
        # TODO(synk): noise > 0 path (torch.randn perturbation of sigma) not implemented.
        raise NotImplementedError("noise > 0 is not supported")

    if rgb_channel_major:
        _, n, l = rgb.shape
        rgb_cm = rgb.astype(jnp.float32)                       # [3, N, L], no copy pass
    else:
        n, l, _ = rgb.shape
        rgb_cm = jnp.transpose(rgb.astype(jnp.float32), (2, 0, 1))  # [3, N, L]

    depth2d = jnp.reshape(depth, (n, l)).astype(jnp.float32)
    sigma2d = jnp.reshape(sigma, (n, l)).astype(jnp.float32)
    norm2d = jnp.reshape(jnp.asarray(rays_norm, jnp.float32), (n, 1))

    # Pad the sample axis to a lane multiple (128): sigma=0 -> alpha=0 -> weight=0,
    # so padded samples contribute exactly nothing and nothing is undefined.
    lp = _round_up(l, 128)
    if lp != l:
        pw = lp - l
        depth2d = jnp.pad(depth2d, ((0, 0), (0, pw)))
        sigma2d = jnp.pad(sigma2d, ((0, 0), (0, pw)))
        rgb_cm = jnp.pad(rgb_cm, ((0, 0), (0, 0), (0, pw)))

    tn = tile_n if tile_n is not None else _pick_tile_n(n, lp)
    grid = (pl.cdiv(n, tn),)

    # Strictly-upper-triangular mask for the exclusive log-space cumsum.
    idx = jnp.arange(lp, dtype=jnp.int32)
    excl_mask = (idx[:, None] < idx[None, :]).astype(jnp.float32)  # [Lp, Lp]

    kernel = functools.partial(_volume_render_kernel, l_last=l - 1)

    cost = pl.CostEstimate(
        flops=2 * n * lp * lp + 20 * n * lp,
        transcendentals=5 * n * lp,
        bytes_accessed=24 * n * lp + 4 * n * lp + 20 * n + 4 * lp * lp,
    )

    color, depth_out, acc_map, weights = pl.pallas_call(
        kernel,
        grid=grid,
        in_specs=[
            pl.BlockSpec((tn, lp), lambda i: (i, 0)),        # depth
            pl.BlockSpec((tn, lp), lambda i: (i, 0)),        # sigma
            pl.BlockSpec((3, tn, lp), lambda i: (0, i, 0)),  # rgb (channel-major)
            pl.BlockSpec((tn, 1), lambda i: (i, 0)),         # rays_norm
            pl.BlockSpec((lp, lp), lambda i: (0, 0)),        # cumsum mask (resident)
        ],
        out_specs=(
            pl.BlockSpec((tn, 3), lambda i: (i, 0)),         # color
            pl.BlockSpec((tn, 1), lambda i: (i, 0)),         # depth
            pl.BlockSpec((tn, 1), lambda i: (i, 0)),         # acc
            pl.BlockSpec((tn, lp), lambda i: (i, 0)),        # weights (lane-dense)
        ),
        out_shape=(
            jax.ShapeDtypeStruct((n, 3), jnp.float32),
            jax.ShapeDtypeStruct((n, 1), jnp.float32),
            jax.ShapeDtypeStruct((n, 1), jnp.float32),
            jax.ShapeDtypeStruct((n, lp), jnp.float32),
        ),
        compiler_params=pltpu.CompilerParams(
            dimension_semantics=("parallel",)),
        cost_estimate=cost,
    )(depth2d, sigma2d, rgb_cm, norm2d, excl_mask)

    if lp != l:
        weights = weights[:, :l]
    weights = weights[..., None]

    if use_mask:
        # TODO(synk): PyTorch's `color + (1 - acc_map[..., None])` broadcasting is
        # ill-shaped; we use the intended per-ray white-background composite.
        color = color + (1.0 - acc_map)
    return color, depth_out, acc_map, weights


def _reference(depth, rgb, sigma, rays_norm):
    """Pure-JAX transcription of the PyTorch forward (noise=0, use_mask=False)."""
    delta = depth[:, 1:, 0] - depth[:, :-1, 0]
    pad = BOARDER_WEIGHT * jnp.ones_like(delta[:, :1])
    delta = jnp.concatenate([delta, pad], axis=-1) * rays_norm
    alpha = 1.0 - jnp.exp(-jax.nn.relu(sigma[..., 0]) * delta)
    w = 1.0 - alpha + EPS
    cp = jnp.cumprod(
        jnp.concatenate([jnp.ones((alpha.shape[0], 1), alpha.dtype), w], -1), -1
    )[:, :-1]
    weights = (alpha * cp)[..., None]
    color = jnp.sum(jax.nn.sigmoid(rgb) * weights, axis=1)
    depth_out = jnp.sum(weights * depth, axis=1)
    acc = jnp.sum(weights, axis=1)
    return color, depth_out, acc, weights


if __name__ == "__main__":
    key = jax.random.PRNGKey(0)
    N, L = 16, 32  # N rays, L samples per ray
    k1, k2, k3, k4 = jax.random.split(key, 4)

    # Monotonically increasing depths per ray (realistic NeRF sampling).
    depth = jnp.cumsum(
        0.05 + jax.random.uniform(k1, (N, L, 1), dtype=jnp.float32), axis=1
    ) + 2.0
    rgb = jax.random.normal(k2, (N, L, 3), dtype=jnp.float32)
    sigma = jax.random.normal(k3, (N, L, 1), dtype=jnp.float32)
    rays_norm = 1.0 + 0.1 * jax.random.uniform(k4, (N, 1), dtype=jnp.float32)

    outs = jax.block_until_ready(volume_renderer(depth, rgb, sigma, rays_norm))
    color, depth_out, acc_map, weights = outs

    # Sanity check against a pure-JAX reference of the PyTorch semantics.
    ref = _reference(depth, rgb, sigma, rays_norm)
    for got, want in zip(outs, ref):
        np.testing.assert_allclose(np.asarray(got), np.asarray(want),
                                   rtol=1e-4, atol=1e-5)

    # Channel-major fast path (producer supplies rgb as [3, N, L]; no transpose pass).
    color_cm, _, _, _ = jax.block_until_ready(
        volume_renderer(depth, jnp.transpose(rgb, (2, 0, 1)), sigma, rays_norm,
                        rgb_channel_major=True))
    np.testing.assert_allclose(np.asarray(color_cm), np.asarray(color),
                               rtol=1e-5, atol=1e-6)

    assert color.shape == (N, 3) and depth_out.shape == (N, 1)
    assert acc_map.shape == (N, 1) and weights.shape == (N, L, 1)
    print("KERNEL_OK")
</pallas_src>

<mosaic_0001>
module attributes {stable_mosaic.version = 11 : i64} {
  func.func @_volume_render_kernel(%arg0: i32, %arg1: memref<16x128xf32, #tpu.memory_space<vmem>>, %arg2: memref<16x128xf32, #tpu.memory_space<vmem>>, %arg3: memref<3x16x128xf32, #tpu.memory_space<vmem>>, %arg4: memref<16x1xf32, #tpu.memory_space<vmem>>, %arg5: memref<128x128xf32, #tpu.memory_space<vmem>>, %arg6: memref<16x3xf32, #tpu.memory_space<vmem>>, %arg7: memref<16x1xf32, #tpu.memory_space<vmem>>, %arg8: memref<16x1xf32, #tpu.memory_space<vmem>>, %arg9: memref<16x128xf32, #tpu.memory_space<vmem>>) attributes {dimension_semantics = [#tpu.dimension_semantics<parallel>], iteration_bounds = array<i64: 1>, scalar_prefetch = 0 : i64, scratch_operands = 0 : i64, tpu.core_type = #tpu.core_type<tc>, window_params = [{transform_indices = @transform_0, window_bounds = array<i64: 16, 128>}, {transform_indices = @transform_1, window_bounds = array<i64: 16, 128>}, {transform_indices = @transform_2, window_bounds = array<i64: 3, 16, 128>}, {transform_indices = @transform_3, window_bounds = array<i64: 16, 1>}, {pipeline_mode = #tpu.pipeline_mode<synchronous>, transform_indices = @transform_4, window_bounds = array<i64: 128, 128>}, {transform_indices = @transform_5, window_bounds = array<i64: 16, 3>}, {transform_indices = @transform_6, window_bounds = array<i64: 16, 1>}, {transform_indices = @transform_7, window_bounds = array<i64: 16, 1>}, {transform_indices = @transform_8, window_bounds = array<i64: 16, 128>}]} {
    %c0 = arith.constant 0 : index
    %c0_0 = arith.constant 0 : index
    %0 = vector.load %arg1[%c0, %c0_0] : memref<16x128xf32, #tpu.memory_space<vmem>>, vector<16x128xf32>
    %c0_1 = arith.constant 0 : index
    %c0_2 = arith.constant 0 : index
    %1 = vector.load %arg2[%c0_1, %c0_2] : memref<16x128xf32, #tpu.memory_space<vmem>>, vector<16x128xf32>
    %c0_3 = arith.constant 0 : index
    %c0_4 = arith.constant 0 : index
    %2 = vector.load %arg4[%c0_3, %c0_4] : memref<16x1xf32, #tpu.memory_space<vmem>>, vector<16x1xf32>
    %3 = vector.extract_strided_slice %0 {offsets = [0, 1], sizes = [16, 127], strides = [1, 1]} : vector<16x128xf32> to vector<16x127xf32>
    %4 = vector.extract_strided_slice %0 {offsets = [0, 127], sizes = [16, 1], strides = [1, 1]} : vector<16x128xf32> to vector<16x1xf32>
    %5 = tpu.concatenate %3, %4 in 1 : vector<16x127xf32>, vector<16x1xf32> -> vector<16x128xf32>
    %6 = tpu.iota {dimensions = array<i32: 1>} : vector<16x128xi32>
    %c31_i32 = arith.constant 31 : i32
    %7 = vector.broadcast %c31_i32 : i32 to vector<16x128xi32>
    %8 = arith.cmpi eq, %6, %7 : vector<16x128xi32>
    %9 = arith.subf %5, %0 : vector<16x128xf32>
    %cst = arith.constant 1.000000e+10 : f32
    %10 = vector.broadcast %cst : f32 to vector<16x128xf32>
    %11 = arith.select %8, %10, %9 : vector<16x128xi1>, vector<16x128xf32>
    %12 = vector.broadcast %2 : vector<16x1xf32> to vector<16x128xf32>
    %13 = arith.mulf %11, %12 : vector<16x128xf32>
    %cst_5 = arith.constant 0.000000e+00 : f32
    %14 = vector.broadcast %cst_5 : f32 to vector<16x128xf32>
    %15 = arith.maximumf %1, %14 : vector<16x128xf32>
    %cst_6 = arith.constant 0.000000e+00 : f32
    %16 = vector.broadcast %cst_6 : f32 to vector<16x128xf32>
    %17 = arith.subf %16, %15 : vector<16x128xf32>
    %18 = arith.mulf %17, %13 : vector<16x128xf32>
    %19 = math.exp %18 : vector<16x128xf32>
    %cst_7 = arith.constant 1.000000e+00 : f32
    %20 = vector.broadcast %cst_7 : f32 to vector<16x128xf32>
    %21 = arith.subf %20, %19 : vector<16x128xf32>
    %cst_8 = arith.constant -23.0258503 : f32
    %22 = vector.broadcast %cst_8 : f32 to vector<16x128xf32>
    %23 = arith.maximumf %18, %22 : vector<16x128xf32>
    %c0_9 = arith.constant 0 : index
    %c0_10 = arith.constant 0 : index
    %24 = vector.load %arg5[%c0_9, %c0_10] : memref<128x128xf32, #tpu.memory_space<vmem>>, vector<128x128xf32>
    %cst_11 = arith.constant dense<0.000000e+00> : vector<16x128xf32>
    %25 = tpu.matmul %23, %24, %cst_11 {dimension_numbers = #tpu.dot_dimension_numbers<[1], [0], [0], [1], [0, 0, 1, 1], [], []>, precision = #tpu.contract_precision<fp32>} : vector<16x128xf32>, vector<128x128xf32>, vector<16x128xf32> -> vector<16x128xf32>
    %26 = math.exp %25 : vector<16x128xf32>
    %27 = arith.mulf %21, %26 : vector<16x128xf32>
    %c0_12 = arith.constant 0 : index
    %c0_13 = arith.constant 0 : index
    %28 = vector.load %arg9[%c0_12, %c0_13] : memref<16x128xf32, #tpu.memory_space<vmem>>, vector<16x128xf32>
    tpu.vector_store %arg9[%c0_12, %c0_13], %27 {strides = array<i32>} : memref<16x128xf32, #tpu.memory_space<vmem>>, vector<16x128xf32>,
    %cst_14 = arith.constant dense<0.000000e+00> : vector<16xf32>
    %29 = vector.multi_reduction <add>, %27, %cst_14 [1] : vector<16x128xf32> to vector<16xf32>
    %30 = vector.shape_cast %29 : vector<16xf32> to vector<16x1xf32>
    %c0_15 = arith.constant 0 : index
    %c0_16 = arith.constant 0 : index
    %31 = vector.load %arg8[%c0_15, %c0_16] : memref<16x1xf32, #tpu.memory_space<vmem>>, vector<16x1xf32>
    tpu.vector_store %arg8[%c0_15, %c0_16], %30 {strides = array<i32>} : memref<16x1xf32, #tpu.memory_space<vmem>>, vector<16x1xf32>,
    %32 = arith.mulf %27, %0 : vector<16x128xf32>
    %cst_17 = arith.constant dense<0.000000e+00> : vector<16xf32>
    %33 = vector.multi_reduction <add>, %32, %cst_17 [1] : vector<16x128xf32> to vector<16xf32>
    %34 = vector.shape_cast %33 : vector<16xf32> to vector<16x1xf32>
    %c0_18 = arith.constant 0 : index
    %c0_19 = arith.constant 0 : index
    %35 = vector.load %arg7[%c0_18, %c0_19] : memref<16x1xf32, #tpu.memory_space<vmem>>, vector<16x1xf32>
    tpu.vector_store %arg7[%c0_18, %c0_19], %34 {strides = array<i32>} : memref<16x1xf32, #tpu.memory_space<vmem>>, vector<16x1xf32>,
    %c0_20 = arith.constant 0 : index
    %c0_21 = arith.constant 0 : index
    %c0_22 = arith.constant 0 : index
    %36 = vector.load %arg3[%c0_20, %c0_21, %c0_22] : memref<3x16x128xf32, #tpu.memory_space<vmem>>, vector<1x16x128xf32>
    %37 = vector.shape_cast %36 : vector<1x16x128xf32> to vector<16x128xf32>
    %38 = arith.negf %37 : vector<16x128xf32>
    %39 = math.exp %38 : vector<16x128xf32>
    %cst_23 = arith.constant 1.000000e+00 : f32
    %40 = vector.broadcast %cst_23 : f32 to vector<16x128xf32>
    %41 = arith.addf %40, %39 : vector<16x128xf32>
    %42 = arith.divf %40, %41 : vector<16x128xf32>
    %43 = arith.mulf %42, %27 : vector<16x128xf32>
    %cst_24 = arith.constant dense<0.000000e+00> : vector<16xf32>
    %44 = vector.multi_reduction <add>, %43, %cst_24 [1] : vector<16x128xf32> to vector<16xf32>
    %45 = vector.shape_cast %44 : vector<16xf32> to vector<16x1xf32>
    %c0_25 = arith.constant 0 : index
    %c0_26 = arith.constant 0 : index
    %46 = vector.load %arg6[%c0_25, %c0_26] : memref<16x3xf32, #tpu.memory_space<vmem>>, vector<16x1xf32>
    tpu.vector_store %arg6[%c0_25, %c0_26], %45 {strides = array<i32>} : memref<16x3xf32, #tpu.memory_space<vmem>>, vector<16x1xf32>,
    %c1 = arith.constant 1 : index
    %c0_27 = arith.constant 0 : index
    %c0_28 = arith.constant 0 : index
    %47 = vector.load %arg3[%c1, %c0_27, %c0_28] : memref<3x16x128xf32, #tpu.memory_space<vmem>>, vector<1x16x128xf32>
    %48 = vector.shape_cast %47 : vector<1x16x128xf32> to vector<16x128xf32>
    %49 = arith.negf %48 : vector<16x128xf32>
    %50 = math.exp %49 : vector<16x128xf32>
    %cst_29 = arith.constant 1.000000e+00 : f32
    %51 = vector.broadcast %cst_29 : f32 to vector<16x128xf32>
    %52 = arith.addf %51, %50 : vector<16x128xf32>
    %53 = arith.divf %51, %52 : vector<16x128xf32>
    %54 = arith.mulf %53, %27 : vector<16x128xf32>
    %cst_30 = arith.constant dense<0.000000e+00> : vector<16xf32>
    %55 = vector.multi_reduction <add>, %54, %cst_30 [1] : vector<16x128xf32> to vector<16xf32>
    %56 = vector.shape_cast %55 : vector<16xf32> to vector<16x1xf32>
    %c0_31 = arith.constant 0 : index
    %c1_32 = arith.constant 1 : index
    %57 = vector.load %arg6[%c0_31, %c1_32] : memref<16x3xf32, #tpu.memory_space<vmem>>, vector<16x1xf32>
    tpu.vector_store %arg6[%c0_31, %c1_32], %56 {strides = array<i32>} : memref<16x3xf32, #tpu.memory_space<vmem>>, vector<16x1xf32>,
    %c2 = arith.constant 2 : index
    %c0_33 = arith.constant 0 : index
    %c0_34 = arith.constant 0 : index
    %58 = vector.load %arg3[%c2, %c0_33, %c0_34] : memref<3x16x128xf32, #tpu.memory_space<vmem>>, vector<1x16x128xf32>
    %59 = vector.shape_cast %58 : vector<1x16x128xf32> to vector<16x128xf32>
    %60 = arith.negf %59 : vector<16x128xf32>
    %61 = math.exp %60 : vector<16x128xf32>
    %cst_35 = arith.constant 1.000000e+00 : f32
    %62 = vector.broadcast %cst_35 : f32 to vector<16x128xf32>
    %63 = arith.addf %62, %61 : vector<16x128xf32>
    %64 = arith.divf %62, %63 : vector<16x128xf32>
    %65 = arith.mulf %64, %27 : vector<16x128xf32>
    %cst_36 = arith.constant dense<0.000000e+00> : vector<16xf32>
    %66 = vector.multi_reduction <add>, %65, %cst_36 [1] : vector<16x128xf32> to vector<16xf32>
    %67 = vector.shape_cast %66 : vector<16xf32> to vector<16x1xf32>
    %c0_37 = arith.constant 0 : index
    %c2_38 = arith.constant 2 : index
    %68 = vector.load %arg6[%c0_37, %c2_38] : memref<16x3xf32, #tpu.memory_space<vmem>>, vector<16x1xf32>
    tpu.vector_store %arg6[%c0_37, %c2_38], %67 {strides = array<i32>} : memref<16x3xf32, #tpu.memory_space<vmem>>, vector<16x1xf32>,
    return
  }
  func.func @transform_0(%arg0: i32) -> (i32, i32) {
    %c0_i32 = arith.constant 0 : i32
    %c0_i32_0 = arith.constant 0 : i32
    return %arg0, %c0_i32 : i32, i32
  }
  func.func @transform_1(%arg0: i32) -> (i32, i32) {
    %c0_i32 = arith.constant 0 : i32
    %c0_i32_0 = arith.constant 0 : i32
    return %arg0, %c0_i32 : i32, i32
  }
  func.func @transform_2(%arg0: i32) -> (i32, i32, i32) {
    %c0_i32 = arith.constant 0 : i32
    %c0_i32_0 = arith.constant 0 : i32
    %c0_i32_1 = arith.constant 0 : i32
    return %c0_i32, %arg0, %c0_i32_0 : i32, i32, i32
  }
  func.func @transform_3(%arg0: i32) -> (i32, i32) {
    %c0_i32 = arith.constant 0 : i32
    %c0_i32_0 = arith.constant 0 : i32
    return %arg0, %c0_i32 : i32, i32
  }
  func.func @transform_4(%arg0: i32) -> (i32, i32) {
    %c0_i32 = arith.constant 0 : i32
    %c0_i32_0 = arith.constant 0 : i32
    %c0_i32_1 = arith.constant 0 : i32
    return %c0_i32, %c0_i32_0 : i32, i32
  }
  func.func @transform_5(%arg0: i32) -> (i32, i32) {
    %c0_i32 = arith.constant 0 : i32
    %c0_i32_0 = arith.constant 0 : i32
    return %arg0, %c0_i32 : i32, i32
  }
  func.func @transform_6(%arg0: i32) -> (i32, i32) {
    %c0_i32 = arith.constant 0 : i32
    %c0_i32_0 = arith.constant 0 : i32
    return %arg0, %c0_i32 : i32, i32
  }
  func.func @transform_7(%arg0: i32) -> (i32, i32) {
    %c0_i32 = arith.constant 0 : i32
    %c0_i32_0 = arith.constant 0 : i32
    return %arg0, %c0_i32 : i32, i32
  }
  func.func @transform_8(%arg0: i32) -> (i32, i32) {
    %c0_i32 = arith.constant 0 : i32
    %c0_i32_0 = arith.constant 0 : i32
    return %arg0, %c0_i32 : i32, i32
  }
}

</mosaic_0001>

<bundles_post_ra>
// kernel: tpu_custom_call.1
= control target key start
LH: loop header
LB: loop body
LE: loop exit
PB: predicated region body
PF: predicated region fallthrough
CT: control target
= control target key end

     0   :  { %14 = vsyncpa [#allocation3], 0  ;;  %s1867_s0 = inlined_call_operand.vmem [shape: f32[16,128], index: 0, kind: input, shape index: {}]   ;;  %s1868_s1 = inlined_call_operand.hbm [shape: f32[16,128], index: 1, kind: input, shape index: {}]   ;;  %s1869_s2 = inlined_call_operand.hbm [shape: f32[3,16,128], index: 2, kind: input, shape index: {}]   ;;  %s1870_s3 = inlined_call_operand.vmem [shape: f32[16,1], index: 3, kind: input, shape index: {}]   ;;  %s1871_s4 = inlined_call_operand.hbm [shape: f32[128,128], index: 4, kind: input, shape index: {}]   ;;  %s1872_s5 = inlined_call_operand.vmem [shape: f32[16,3], index: 5, kind: output, shape index: {0}]   ;;  %s1873_s6 = inlined_call_operand.vmem [shape: f32[16,1], index: 6, kind: output, shape index: {1}]   ;;  %s1874_s7 = inlined_call_operand.vmem [shape: f32[16,1], index: 7, kind: output, shape index: {2}]   ;;  %s1875_s8 = inlined_call_operand.hbm [shape: f32[16,128], index: 8, kind: output, shape index: {3}]  }
   0x1   :  { %15 = vsyncpa [#allocation6], 0 }
   0x2   :  { %16 = vsyncpa [#allocation4], 0  ;;  %s1391_s27 = smov [#allocation5]   ;;  %s1392_s29 = smov [#allocation2]  }
   0x3   :  { %s36_s28 = sshll.u32 %s1391_s27, 4  ;;  %s24_s30 = sshll.u32 %s1392_s29, 4  ;;  %s37_s28 = int_to_ptr.vmem [resolvable:$true] %s36_s28  ;;  %s25_s30 = int_to_ptr.vmem [resolvable:$true] %s24_s30 }
   0x4   :  { %s1313_s9 = scalar_lea.vmem %s37_s28, 768  ;;  %p1318_p1 = scmp.lt.s32.totalorder %s37_s28, %s37_s28 }
   0x5   :  { %p1314_p0 = scmp.ne.s32.totalorder %s37_s28, %s1313_s9  ;;  %p1319_p2 = scmp.lt.s32.totalorder %s1313_s9, %s1313_s9 }
   0x7   :  { %p1320_p3 = por %p1319_p2, %p1318_p1 }
   0x9   :  { %p1321_p4 = pnand %p1320_p3, %p1314_p0 }
   0xb   :  { %1324 = shalt.err (!%p1321_p4)
}
   0xc   :  { %s1393_s10 = smov 128   ;;  %s1394_s11 = smov 8  }
   0xd   :  { %42 = dma.hbm_to_vmem [thread:$0]  %s1869_s2, 768, %s37_s28, [#allocation6], %s1393_s10, %s1393_s10, %s1394_s11  }
   0xe   :  { %s1333_s14 = scalar_lea.vmem %s25_s30, 256  ;;  %p1338_p6 = scmp.lt.s32.totalorder %s25_s30, %s25_s30 }
   0xf   :  { %p1334_p5 = scmp.ne.s32.totalorder %s25_s30, %s1333_s14  ;;  %p1339_p7 = scmp.lt.s32.totalorder %s1333_s14, %s1333_s14 }
  0x11   :  { %p1340_p8 = por %p1339_p7, %p1338_p6 }
  0x13   :  { %p1341_p9 = pnand %p1340_p8, %p1334_p5 }
  0x15   :  { %1344 = shalt.err (!%p1341_p9)
}
  0x16   :  { %30 = dma.hbm_to_vmem [thread:$0]  %s1868_s1, 256, %s25_s30, [#allocation3], %s1393_s10, %s1393_s10, %s1394_s11  }
  0x17   :  { %s1395_s17 = smov [#allocation7]  }
  0x18   :  { %s50_s18 = sshll.u32 %s1395_s17, 4  ;;  %s51_s18 = int_to_ptr.vmem [resolvable:$true] %s50_s18 }
  0x19   :  { %s1353_s19 = scalar_lea.vmem %s51_s18, 2048  ;;  %p1358_p11 = scmp.lt.s32.totalorder %s51_s18, %s51_s18 }
  0x1a   :  { %p1354_p10 = scmp.ne.s32.totalorder %s51_s18, %s1353_s19  ;;  %p1359_p12 = scmp.lt.s32.totalorder %s1353_s19, %s1353_s19 }
  0x1c   :  { %p1360_p13 = por %p1359_p12, %p1358_p11 }
  0x1e   :  { %p1361_p0 = pnand %p1360_p13, %p1354_p10 }
  0x20   :  { %1364 = shalt.err (!%p1361_p0)
}
  0x21   :  { %56 = dma.hbm_to_vmem [thread:$0]  %s1871_s4, 2048, %s51_s18, [#allocation6], %s1393_s10, %s1393_s10, %s1394_s11  }
  0x22   :  { %1385 = dma.done.wait [#allocation3], 256  }
  0x23   :  { %1386 = vsyncadd [#allocation3], 4294967040 }
  0x24   :  { %1387 = dma.done.wait [#allocation6], 2816  }
  0x25   :  { %1388 = vsyncadd [#allocation6], 4294964480  ;;  %v1396_v0 = vmov 0   ;;  %v71_v1 = vld [vmem:[%s1870_s3 + $0x8] sm:$0xff]  ;;  %v70_v2 = vld [vmem:[%s1870_s3] sm:$0xff]  ;;  %vm80_vm0 = vcmask 1039360  }
  0x26   :  { %1272 = vset.pattern.permute.xlu1 %v1396_v0  ;;  %1271 = vset.pattern.permute.xlu0 %v1396_v0  ;;  %v1471_v3 = vld [vmem:[%s1867_s0 + $0x8] sm:$0xff]  ;;  %v1476_v4 = vld [vmem:[%s1867_s0] sm:$0xff]  ;;  %v131_v5 = vld [vmem:[#allocation7 + $0x78] sm:$0xff]  ;;  %s1397_s0 = smov 127   ;;  %s1398_s3 = smov [#allocation8]  }
  0x27   :  { %97 = vperm.xlu1 %1272, %v71_v1   ;;  %92 = vperm.xlu0 %1271, %v70_v2   ;;  %v130_v6 = vld [vmem:[#allocation7 + $0x70] sm:$0xff]  ;;  %v1478_v7 = vand.u32 4294901760, %v131_v5  ;;  %v129_v9 = vld [vmem:[#allocation7 + $0x68] sm:$0xff]  ;;  %v128_v10 = vld [vmem:[#allocation7 + $0x60] sm:$0xff]  ;;  %s920_s27 = sshll.u32 %s1398_s3, 4  ;;  %s921_s27 = int_to_ptr.vmem [resolvable:$true] %s920_s27 }
  0x28   :  { %v1480_v8 = vand.u32 4294901760, %v130_v6  ;;  %v127_v11 = vld [vmem:[#allocation7 + $0x58] sm:$0xff]  ;;  %v1482_v12 = vand.u32 4294901760, %v129_v9  ;;  %v1484_v13 = vand.u32 4294901760, %v128_v10  ;;  %v126_v15 = vld [vmem:[#allocation7 + $0x50] sm:$0xff]  ;;  %v125_v16 = vld [vmem:[#allocation7 + $0x48] sm:$0xff]  ;;  %p1370_p2 = scmp.lt.s32.totalorder %s921_s27, %s921_s27 }
  0x29   :  { %v1486_v14 = vand.u32 4294901760, %v127_v11  ;;  %v124_v17 = vld [vmem:[#allocation7 + $0x40] sm:$0xff]  ;;  %v1489_v18 = vsub.f32 %v131_v5, %v1478_v7  ;;  %1053 = vmatprep.subr.mxu0 %v1478_v7  ;;  %v1495_v20 = vand.u32 4294901760, %v126_v15  ;;  %v1497_v21 = vand.u32 4294901760, %v125_v16  ;;  %v123_v38 = vld [vmem:[#allocation7 + $0x38] sm:$0xff]  ;;  %v122_v39 = vld [vmem:[#allocation7 + $0x30] sm:$0xff] }
  0x2a   :  { %v1492_v19 = vsub.f32 %v130_v6, %v1480_v8  ;;  %v1502_v22 = vsub.f32 %v129_v9, %v1482_v12  ;;  %v1505_v23 = vsub.f32 %v128_v10, %v1484_v13  ;;  %v1510_v25 = vand.u32 4294901760, %v124_v17  ;;  %1054 = vmatpush3.msra.mxu0 %v1478_v7  ;;  %v121_v43 = vld [vmem:[#allocation7 + $0x28] sm:$0xff]  ;;  %v120_v45 = vld [vmem:[#allocation7 + $0x20] sm:$0xff]  ;;  %v119_v53 = vld [vmem:[#allocation7 + $0x18] sm:$0xff]  ;;  %s1365_s28 = scalar_lea.vmem %s921_s27, 256 }
  0x2b   :  { %76 = vrot.lane.b32.xlu1 %v1471_v3, %s1397_s0  ;;  %74 = vrot.lane.b32.xlu0 %v1476_v4, %s1397_s0  ;;  %v1508_v24 = vsub.f32 %v127_v11, %v1486_v14  ;;  %v1513_v26 = vand.u32 4294901760, %v1489_v18  ;;  %v1520_v28 = vsub.f32 %v126_v15, %v1495_v20  ;;  %v1530_v31 = vsub.f32 %v125_v16, %v1497_v21  ;;  %v118_v59 = vld [vmem:[#allocation7 + $0x10] sm:$0xff]  ;;  %v117_v1 = vld [vmem:[#allocation7 + $0x8] sm:$0xff]  ;;  %v116_v11 = vld [vmem:[#allocation7] sm:$0xff]  ;;  %p1366_p1 = scmp.ne.s32.totalorder %s921_s27, %s1365_s28  ;;  %p1371_p3 = scmp.lt.s32.totalorder %s1365_s28, %s1365_s28 }
  0x2c   :  { %v1516_v27 = vand.u32 4294901760, %v1492_v19  ;;  %v1523_v29 = vand.u32 4294901760, %v1502_v22  ;;  %v1526_v30 = vand.u32 4294901760, %v1505_v23  ;;  %1055 = vmatprep.subr.mxu0 %v1480_v8  ;;  %v1547_v37 = vsub.f32 %v124_v17, %v1510_v25 }
  0x2d   :  { %v237_v32 = vsub.f32 %v1489_v18, %v1513_v26  ;;  %v1537_v34 = vand.u32 4294901760, %v1508_v24  ;;  %1056 = vmatpush3.msra.mxu0 %v1480_v8  ;;  %v1543_v36 = vand.u32 4294901760, %v1520_v28  ;;  %v1553_v44 = vand.u32 4294901760, %v1530_v31  ;;  %p1372_p4 = por %p1371_p3, %p1370_p2 }
  0x2e   :  { %v244_v33 = vsub.f32 %v1492_v19, %v1516_v27  ;;  %v251_v35 = vsub.f32 %v1502_v22, %v1523_v29  ;;  %1057 = vmatprep.subr.mxu0 %v1482_v12  ;;  %v258_v42 = vsub.f32 %v1505_v23, %v1526_v30  ;;  %v1559_v48 = vand.u32 4294901760, %v123_v38 }
  0x2f   :  { %v238_v40 = vand.u32 4294901760, %v237_v32  ;;  %1058 = vmatpush3.msra.mxu0 %v1482_v12  ;;  %v265_v47 = vsub.f32 %v1508_v24, %v1537_v34  ;;  %v1561_v49 = vand.u32 4294901760, %v122_v39  ;;  %v272_v50 = vsub.f32 %v1520_v28, %v1543_v36  ;;  %p1373_p5 = pnand %p1372_p4, %p1366_p1 }
  0x30   :  { %v245_v41 = vand.u32 4294901760, %v244_v33  ;;  %1059 = vmatprep.subr.mxu0 %v1484_v13  ;;  %v252_v46 = vand.u32 4294901760, %v251_v35  ;;  %v1566_v51 = vand.u32 4294901760, %v1547_v37  ;;  %v1569_v52 = vand.u32 4294901760, %v121_v43 }
  0x31   :  { %1088 = vmatprep.subr.mxu1 %v238_v40  ;;  %1060 = vmatpush3.msra.mxu0 %v1484_v13  ;;  %v259_v54 = vand.u32 4294901760, %v258_v42  ;;  %v1572_v55 = vsub.f32 %v123_v38, %v1559_v48  ;;  %v1576_v56 = vsub.f32 %v122_v39, %v1561_v49  ;;  %v1578_v57 = vand.u32 4294901760, %v120_v45 }
  0x32   :  { %1089 = vmatpush3.msra.mxu1 %v238_v40  ;;  %1061 = vmatprep.subr.mxu0 %v1486_v14  ;;  %v279_v58 = vsub.f32 %v1530_v31, %v1553_v44  ;;  %v266_v60 = vand.u32 4294901760, %v265_v47  ;;  %v1588_v62 = vsub.f32 %v121_v43, %v1569_v52  ;;  %v1590_v63 = vand.u32 4294901760, %v119_v53 }
  0x33   :  { %1090 = vmatprep.subr.mxu1 %v245_v41  ;;  %1062 = vmatpush3.msra.mxu0 %v1486_v14  ;;  %v1584_v61 = vand.u32 4294901760, %v1572_v55  ;;  %v286_v0 = vsub.f32 %v1547_v37, %v1566_v51  ;;  %v273_v2 = vand.u32 4294901760, %v272_v50  ;;  %v1596_v5 = vand.u32 4294901760, %v1576_v56 }
  0x34   :  { %1091 = vmatpush3.msra.mxu1 %v245_v41  ;;  %1063 = vmatprep.subr.mxu0 %v1495_v20  ;;  %v1600_v6 = vsub.f32 %v120_v45, %v1578_v57  ;;  %v1602_v9 = vand.u32 4294901760, %v118_v59  ;;  %v280_v10 = vand.u32 4294901760, %v279_v58  ;;  %v1608_v16 = vand.u32 4294901760, %v1588_v62 }
  0x35   :  { %1092 = vmatprep.subr.mxu1 %v252_v46  ;;  %1064 = vmatpush3.msra.mxu0 %v1495_v20  ;;  %v293_v15 = vsub.f32 %v1572_v55, %v1584_v61  ;;  %v1612_v17 = vsub.f32 %v119_v53, %v1590_v63  ;;  %v1614_v32 = vand.u32 4294901760, %v117_v1  ;;  %v287_v33 = vand.u32 4294901760, %v286_v0 }
  0x36   :  { %1093 = vmatpush3.msra.mxu1 %v252_v46  ;;  %1065 = vmatprep.subr.mxu0 %v1497_v21  ;;  %1888 = vst [vmem:[#allocation12_spill] sm:$0xff] %v1608_v16  ;;  %v300_v35 = vsub.f32 %v1576_v56, %v1596_v5  ;;  %v1620_v38 = vand.u32 4294901760, %v1600_v6  ;;  %v1624_v39 = vsub.f32 %v118_v59, %v1602_v9  ;;  %v1626_v40 = vand.u32 4294901760, %v116_v11 }
  0x37   :  { %1094 = vmatprep.subr.mxu1 %v259_v54  ;;  %1066 = vmatpush3.msra.mxu0 %v1497_v21  ;;  %v294_v41 = vand.u32 4294901760, %v293_v15  ;;  %v307_v42 = vsub.f32 %v1588_v62, %v1608_v16  ;;  %v1632_v43 = vand.u32 4294901760, %v1612_v17  ;;  %v1636_v45 = vsub.f32 %v117_v1, %v1614_v32 }
  0x38   :  { %1095 = vmatpush3.msra.mxu1 %v259_v54  ;;  %1067 = vmatprep.subr.mxu0 %v1510_v25  ;;  %1889 = vst [vmem:[#allocation13_spill] sm:$0xff] %v1620_v38  ;;  %v301_v46 = vand.u32 4294901760, %v300_v35  ;;  %v314_v47 = vsub.f32 %v1600_v6, %v1620_v38  ;;  %v1642_v50 = vand.u32 4294901760, %v1624_v39  ;;  %v1646_v53 = vsub.f32 %v116_v11, %v1626_v40 }
  0x39   :  { %1096 = vmatprep.subr.mxu1 %v266_v60  ;;  %1068 = vmatpush3.msra.mxu0 %v1510_v25  ;;  %1890 = vst [vmem:[#allocation14_spill] sm:$0xff] %v1632_v43  ;;  %v308_v54 = vand.u32 4294901760, %v307_v42  ;;  %v321_v58 = vsub.f32 %v1612_v17, %v1632_v43  ;;  %v1652_v59 = vand.u32 4294901760, %v1636_v45 }
  0x3a   :  { %1097 = vmatpush3.msra.mxu1 %v266_v60  ;;  %1069 = vmatprep.subr.mxu0 %v1559_v48  ;;  %1891 = vst [vmem:[#allocation15_spill] sm:$0xff] %v1642_v50  ;;  %v315_v60 = vand.u32 4294901760, %v314_v47  ;;  %v328_v0 = vsub.f32 %v1624_v39, %v1642_v50  ;;  %v1659_v1 = vand.u32 4294901760, %v1646_v53  ;;  %v69_v47 = vld [vmem:[#allocation2 + $0x8] sm:$0xff] }
  0x3b   :  { %1098 = vmatprep.subr.mxu1 %v273_v2  ;;  %1070 = vmatpush3.msra.mxu0 %v1559_v48  ;;  %1892 = vst [vmem:[#allocation16_spill] sm:$0xff] %v1652_v59 }
  0x3c   :  { %1099 = vmatpush3.msra.mxu1 %v273_v2  ;;  %1071 = vmatprep.subr.mxu0 %v1561_v49  ;;  %1893 = vst [vmem:[#allocation17_spill] sm:$0xff] %v1659_v1  ;;  %v322_v2 = vand.u32 4294901760, %v321_v58  ;;  %v329_v11 = vand.u32 4294901760, %v328_v0  ;;  %v342_v15 = vsub.f32 %v1646_v53, %v1659_v1 }
  0x3d   :  { %1100 = vmatprep.subr.mxu1 %v280_v10  ;;  %1072 = vmatpush3.msra.mxu0 %v1561_v49 }
  0x3e   :  { %1101 = vmatpush3.msra.mxu1 %v280_v10  ;;  %1073 = vmatprep.subr.mxu0 %v1569_v52  ;;  %v335_v10 = vsub.f32 %v1636_v45, %v1652_v59  ;;  %v343_v35 = vand.u32 4294901760, %v342_v15 }
  0x3f   :  { %1102 = vmatprep.subr.mxu1 %v287_v33  ;;  %1074 = vmatpush3.msra.mxu0 %v1569_v52 }
  0x40   :  { %1103 = vmatpush3.msra.mxu1 %v287_v33  ;;  %1075 = vmatprep.subr.mxu0 %v1578_v57  ;;  %v336_v33 = vand.u32 4294901760, %v335_v10 }
  0x41   :  { %1104 = vmatprep.subr.mxu1 %v294_v41  ;;  %1076 = vmatpush3.msra.mxu0 %v1578_v57 }
  0x42   :  { %1105 = vmatpush3.msra.mxu1 %v294_v41  ;;  %1077 = vmatprep.subr.mxu0 %v1590_v63  ;;  %v83_v41 = vlaneseq }
  0x43   :  { %1106 = vmatprep.subr.mxu1 %v301_v46  ;;  %1078 = vmatpush3.msra.mxu0 %v1590_v63 }
  0x44   :  { %1107 = vmatpush3.msra.mxu1 %v301_v46  ;;  %1079 = vmatprep.subr.mxu0 %v1602_v9  ;;  %v84_v58 = vand.u32 127, %v83_v41 }
  0x45   :  { %1108 = vmatprep.subr.mxu1 %v308_v54  ;;  %1080 = vmatpush3.msra.mxu0 %v1602_v9 }
  0x46   :  { %1109 = vmatpush3.msra.mxu1 %v308_v54  ;;  %1081 = vmatprep.subr.mxu0 %v1614_v32  ;;  %v68_v54 = vld [vmem:[#allocation2] sm:$0xff]  ;;  %vm85_vm1 = vcmp.eq.s32.totalorder %v84_v58, 31 }
  0x47   :  { %1110 = vmatprep.subr.mxu1 %v315_v60  ;;  %1082 = vmatpush3.msra.mxu0 %v1614_v32  ;;  %v102_v0 = vmax.f32 %v68_v54, 0.0 }
  0x48   :  { %1111 = vmatpush3.msra.mxu1 %v315_v60  ;;  %1083 = vmatprep.subr.mxu0 %v1626_v40  ;;  %v103_v60 = vmax.f32 %v69_v47, 0.0 }
  0x49   :  { %1112 = vmatprep.subr.mxu1 %v322_v2  ;;  %1084 = vmatpush3.msra.mxu0 %v1626_v40  ;;  %v104_v59 = vsub.f32 0.0, %v102_v0 }
  0x4a   :  { %1113 = vmatpush3.msra.mxu1 %v322_v2  ;;  %1123 = vmatprep.subr.mxu0 %v1489_v18  ;;  %v105_v1 = vsub.f32 0.0, %v103_v60 }
  0x4b   :  { %1114 = vmatprep.subr.mxu1 %v329_v11 }
  0x4c   :  { %1115 = vmatpush3.msra.mxu1 %v329_v11 }
  0x4d   :  { %1116 = vmatprep.subr.mxu1 %v336_v33 }
  0x4e   :  { %1117 = vmatpush3.msra.mxu1 %v336_v33 }
  0x4f   :  { %1118 = vmatprep.subr.mxu1 %v343_v35 }
  0x50   :  { %1119 = vmatpush3.msra.mxu1 %v343_v35 }
  0x51   :  { %1158 = vmatprep.subr.mxu1 %v1478_v7 }
  0xa2   :  { %v98_v42 = vpop.permute.xlu1 %97  ;;  %v93_v46 = vpop.permute.xlu0 %92 }
  0xa6   :  { %v77_v2 = vpop.permute.xlu1 %76  ;;  %v75_v10 = vpop.permute.xlu0 %74 }
  0xa7   :  { %v82_v11 = vsel %vm80_vm0, %v77_v2, %v1471_v3  ;;  %v81_v15 = vsel %vm80_vm0, %v75_v10, %v1476_v4 }
  0xa8   :  { %v87_v33 = vsub.f32 %v82_v11, %v1471_v3  ;;  %v86_v35 = vsub.f32 %v81_v15, %v1476_v4 }
  0xaa   :  { %v89_v50 = vsel %vm85_vm1, 1e+10, %v87_v33  ;;  %v88_v43 = vsel %vm85_vm1, 1e+10, %v86_v35 }
  0xab   :  { %v101_v38 = vmul.f32 %v98_v42, %v89_v50  ;;  %v100_v41 = vmul.f32 %v93_v46, %v88_v43 }
  0xad   :  { %v1678_v16 = vmul.f32 %v105_v1, %v101_v38  ;;  %v1680_v47 = vmul.f32 %v104_v59, %v100_v41 }
  0xaf   :  { %v114_v54 = vmax.f32 %v1680_v47, -23.02585  ;;  %v115_v58 = vmax.f32 %v1678_v16, -23.02585 }
  0xb1   :  { %v1684_v2 = vand.u32 4294901760, %v114_v54  ;;  %v1686_v10 = vand.u32 4294901760, %v115_v58 }
  0xb3   :  { %1120 = vmatprep.mubr.f32.mxu1 %v1684_v2  ;;  %v214_v60 = vsub.f32 %v114_v54, %v1684_v2  ;;  %v1692_v43 = vsub.f32 %v115_v58, %v1686_v10 }
  0xb4   :  { %1121 = vmatmul.mubr.f32.vlgmr.msra.gmra.mxu1 %v1686_v10 }
  0xb5   :  { %1159 = vmatpush3.msra.mxu1 %v1478_v7  ;;  %v215_v38 = vand.u32 4294901760, %v214_v60  ;;  %v225_v50 = vand.u32 4294901760, %v1692_v43 }
  0xb6   :  { %1160 = vmatprep.subr.mxu1 %v1480_v8 }
  0xb7   :  { %1161 = vmatpush3.msra.mxu1 %v1480_v8  ;;  %1190 = vmatprep.mubr.f32.mxu1 %v215_v38  ;;  %v216_v59 = vsub.f32 %v214_v60, %v215_v38  ;;  %v226_v1 = vsub.f32 %v1692_v43, %v225_v50 }
  0xb8   :  { %1162 = vmatprep.subr.mxu1 %v1482_v12 }
  0xb9   :  { %1163 = vmatpush3.msra.mxu1 %v1482_v12  ;;  %v217_v42 = vand.u32 4294901760, %v216_v59  ;;  %v227_v46 = vand.u32 4294901760, %v226_v1 }
  0xba   :  { %1164 = vmatprep.subr.mxu1 %v1484_v13 }
  0xbb   :  { %1165 = vmatpush3.msra.mxu1 %v1484_v13  ;;  %1085 = vmatprep.mubr.f32.mxu0 %v217_v42 }
  0xbc   :  { %1166 = vmatprep.subr.mxu1 %v1486_v14  ;;  %1086 = vmatmul.mubr.f32.vlgmr.msra.gmra.mxu0 %v227_v46 }
  0xbd   :  { %1124 = vmatpush3.msra.mxu0 %v1489_v18  ;;  %1167 = vmatpush3.msra.mxu1 %v1486_v14  ;;  %v1899_v18 = vld [vmem:[#allocation17_spill] sm:$0xff] }
  0xbe   :  { %1125 = vmatprep.subr.mxu0 %v1492_v19  ;;  %1155 = vmatprep.mubr.f32.mxu0 %v214_v60 }
  0xbf   :  { %1168 = vmatprep.subr.mxu1 %v1495_v20  ;;  %1126 = vmatpush3.msra.mxu0 %v1492_v19  ;;  %v840_v19 = vld [vmem:[#allocation5 + $0x8] sm:$0xff] }
  0xc0   :  { %1169 = vmatpush3.msra.mxu1 %v1495_v20  ;;  %1127 = vmatprep.subr.mxu0 %v1502_v22 }
  0xc1   :  { %1170 = vmatprep.subr.mxu1 %v1497_v21  ;;  %1128 = vmatpush3.msra.mxu0 %v1502_v22 }
  0xc2   :  { %1171 = vmatpush3.msra.mxu1 %v1497_v21  ;;  %1129 = vmatprep.subr.mxu0 %v1505_v23 }
  0xc3   :  { %1172 = vmatprep.subr.mxu1 %v1510_v25  ;;  %1130 = vmatpush3.msra.mxu0 %v1505_v23 }
  0xc4   :  { %1173 = vmatpush3.msra.mxu1 %v1510_v25  ;;  %1131 = vmatprep.subr.mxu0 %v1508_v24 }
  0xc5   :  { %1174 = vmatprep.subr.mxu1 %v1559_v48  ;;  %1132 = vmatpush3.msra.mxu0 %v1508_v24 }
  0xc6   :  { %1175 = vmatpush3.msra.mxu1 %v1559_v48  ;;  %1133 = vmatprep.subr.mxu0 %v1520_v28 }
  0xc7   :  { %1176 = vmatprep.subr.mxu1 %v1561_v49  ;;  %1134 = vmatpush3.msra.mxu0 %v1520_v28 }
  0xc8   :  { %1177 = vmatpush3.msra.mxu1 %v1561_v49  ;;  %1135 = vmatprep.subr.mxu0 %v1530_v31 }
  0xc9   :  { %1178 = vmatprep.subr.mxu1 %v1569_v52  ;;  %1136 = vmatpush3.msra.mxu0 %v1530_v31 }
  0xca   :  { %1179 = vmatpush3.msra.mxu1 %v1569_v52  ;;  %1137 = vmatprep.subr.mxu0 %v1547_v37 }
  0xcb   :  { %1180 = vmatprep.subr.mxu1 %v1578_v57  ;;  %1138 = vmatpush3.msra.mxu0 %v1547_v37  ;;  %v862_v37 = vld [vmem:[#allocation5 + $0x10] sm:$0xff] }
  0xcc   :  { %1181 = vmatpush3.msra.mxu1 %v1578_v57  ;;  %1139 = vmatprep.subr.mxu0 %v1572_v55 }
  0xcd   :  { %1182 = vmatprep.subr.mxu1 %v1590_v63  ;;  %1140 = vmatpush3.msra.mxu0 %v1572_v55 }
  0xce   :  { %1183 = vmatpush3.msra.mxu1 %v1590_v63  ;;  %1141 = vmatprep.subr.mxu0 %v1576_v56 }
  0xcf   :  { %1184 = vmatprep.subr.mxu1 %v1602_v9  ;;  %1142 = vmatpush3.msra.mxu0 %v1576_v56  ;;  %v887_v56 = vld [vmem:[#allocation5 + $0x28] sm:$0xff] }
  0xd0   :  { %1185 = vmatpush3.msra.mxu1 %v1602_v9  ;;  %1143 = vmatprep.subr.mxu0 %v1588_v62 }
  0xd1   :  { %1186 = vmatprep.subr.mxu1 %v1614_v32  ;;  %1144 = vmatpush3.msra.mxu0 %v1588_v62 }
  0xd2   :  { %1187 = vmatpush3.msra.mxu1 %v1614_v32  ;;  %1145 = vmatprep.subr.mxu0 %v1600_v6 }
  0xd3   :  { %1188 = vmatprep.subr.mxu1 %v1626_v40  ;;  %1146 = vmatpush3.msra.mxu0 %v1600_v6 }
  0xd4   :  { %1189 = vmatpush3.msra.mxu1 %v1626_v40  ;;  %1147 = vmatprep.subr.mxu0 %v1612_v17 }
  0xd5   :  { %1191 = vmatmul.mubr.f32.vlgmr.msra.gmra.mxu1 %v225_v50  ;;  %1228 = vmatprep.subr.mxu1 %v1478_v7 }
  0xd6   :  { %1148 = vmatpush3.msra.mxu0 %v1612_v17  ;;  %1229 = vmatpush3.msra.mxu1 %v1478_v7  ;;  %v1894_v7 = vld [vmem:[#allocation12_spill] sm:$0xff] }
  0xd7   :  { %1260 = vmatprep.mubr.f32.mxu1 %v1684_v2  ;;  %1149 = vmatprep.subr.mxu0 %v1624_v39 }
  0xd8   :  { %1230 = vmatprep.subr.mxu1 %v1480_v8  ;;  %1150 = vmatpush3.msra.mxu0 %v1624_v39  ;;  %v944_v39 = vmul.f32 -1.442695, %v887_v56 }
  0xd9   :  { %1231 = vmatpush3.msra.mxu1 %v1480_v8  ;;  %1151 = vmatprep.subr.mxu0 %v1636_v45  ;;  %v1895_v8 = vld [vmem:[#allocation13_spill] sm:$0xff] }
  0xda   :  { %1232 = vmatprep.subr.mxu1 %v1482_v12  ;;  %1152 = vmatpush3.msra.mxu0 %v1636_v45 }
  0xdb   :  { %1233 = vmatpush3.msra.mxu1 %v1482_v12  ;;  %1153 = vmatprep.subr.mxu0 %v1646_v53  ;;  %v1896_v12 = vld [vmem:[#allocation14_spill] sm:$0xff] }
  0xdc   :  { %1234 = vmatprep.subr.mxu1 %v1484_v13  ;;  %1154 = vmatpush3.msra.mxu0 %v1646_v53 }
  0xdd   :  { %1235 = vmatpush3.msra.mxu1 %v1484_v13  ;;  %1156 = vmatmul.mubr.f32.vlgmr.msra.gmra.mxu0 %v1692_v43  ;;  %v1897_v13 = vld [vmem:[#allocation15_spill] sm:$0xff] }
  0xde   :  { %1193 = vmatprep.subr.mxu0 %v1513_v26  ;;  %1236 = vmatprep.subr.mxu1 %v1486_v14 }
  0xdf   :  { %1194 = vmatpush3.msra.mxu0 %v1513_v26  ;;  %1225 = vmatprep.mubr.f32.mxu0 %v1684_v2 }
  0xe0   :  { %1237 = vmatpush3.msra.mxu1 %v1486_v14  ;;  %1195 = vmatprep.subr.mxu0 %v1516_v27  ;;  %v1898_v14 = vld [vmem:[#allocation16_spill] sm:$0xff] }
  0xe1   :  { %1238 = vmatprep.subr.mxu1 %v1495_v20  ;;  %1196 = vmatpush3.msra.mxu0 %v1516_v27  ;;  %v839_v27 = vld [vmem:[#allocation5] sm:$0xff] }
  0xe2   :  { %1239 = vmatpush3.msra.mxu1 %v1495_v20  ;;  %1197 = vmatprep.subr.mxu0 %v1523_v29  ;;  %v863_v20 = vld [vmem:[#allocation5 + $0x18] sm:$0xff]  ;;  %v939_v31 = vmul.f32 -1.442695, %v839_v27 }
  0xe3   :  { %1240 = vmatprep.subr.mxu1 %v1497_v21  ;;  %1198 = vmatpush3.msra.mxu0 %v1523_v29  ;;  %v942_v23 = vmul.f32 -1.442695, %v863_v20  ;;  %v886_v29 = vld [vmem:[#allocation5 + $0x20] sm:$0xff] }
  0xe4   :  { %1241 = vmatpush3.msra.mxu1 %v1497_v21  ;;  %1199 = vmatprep.subr.mxu0 %v1526_v30  ;;  %v940_v21 = vmul.f32 -1.442695, %v840_v19 }
  0xe5   :  { %1242 = vmatprep.subr.mxu1 %v1510_v25  ;;  %1200 = vmatpush3.msra.mxu0 %v1526_v30 }
  0xe6   :  { %1243 = vmatpush3.msra.mxu1 %v1510_v25  ;;  %1201 = vmatprep.subr.mxu0 %v1537_v34  ;;  %1273 = vpow2.f32 %v940_v21 }
  0xe7   :  { %1244 = vmatprep.subr.mxu1 %v1559_v48  ;;  %1202 = vmatpush3.msra.mxu0 %v1537_v34  ;;  %1275 = vpow2.f32 %v942_v23 }
  0xe8   :  { %1245 = vmatpush3.msra.mxu1 %v1559_v48  ;;  %1203 = vmatprep.subr.mxu0 %v1543_v36  ;;  %1277 = vpow2.f32 %v939_v31 }
  0xe9   :  { %1246 = vmatprep.subr.mxu1 %v1561_v49  ;;  %1204 = vmatpush3.msra.mxu0 %v1543_v36 }
  0xea   :  { %1247 = vmatpush3.msra.mxu1 %v1561_v49  ;;  %1205 = vmatprep.subr.mxu0 %v1553_v44  ;;  %v943_v49 = vmul.f32 -1.442695, %v886_v29 }
  0xeb   :  { %1248 = vmatprep.subr.mxu1 %v1569_v52  ;;  %1206 = vmatpush3.msra.mxu0 %v1553_v44 }
  0xec   :  { %1249 = vmatpush3.msra.mxu1 %v1569_v52  ;;  %1207 = vmatprep.subr.mxu0 %v1566_v51  ;;  %v941_v52 = vmul.f32 -1.442695, %v862_v37  ;;  %1279 = vpow2.f32 %v943_v49 }
  0xed   :  { %1250 = vmatprep.subr.mxu1 %v1578_v57  ;;  %1208 = vmatpush3.msra.mxu0 %v1566_v51 }
  0xee   :  { %1251 = vmatpush3.msra.mxu1 %v1578_v57  ;;  %1209 = vmatprep.subr.mxu0 %v1584_v61  ;;  %1281 = vpow2.f32 %v941_v52 }
  0xef   :  { %1252 = vmatprep.subr.mxu1 %v1590_v63  ;;  %1210 = vmatpush3.msra.mxu0 %v1584_v61  ;;  %v110_v61 = vmul.f32 1.442695, %v1678_v16 }
  0xf0   :  { %1253 = vmatpush3.msra.mxu1 %v1590_v63  ;;  %1211 = vmatprep.subr.mxu0 %v1596_v5  ;;  %v108_v63 = vmul.f32 1.442695, %v1680_v47 }
  0xf1   :  { %1254 = vmatprep.subr.mxu1 %v1602_v9  ;;  %1212 = vmatpush3.msra.mxu0 %v1596_v5  ;;  %1283 = vpow2.f32 %v110_v61 }
  0xf2   :  { %1255 = vmatpush3.msra.mxu1 %v1602_v9  ;;  %1213 = vmatprep.subr.mxu0 %v1894_v7  ;;  %1285 = vpow2.f32 %v108_v63 }
  0xf3   :  { %1256 = vmatprep.subr.mxu1 %v1614_v32  ;;  %1214 = vmatpush3.msra.mxu0 %v1894_v7  ;;  %v1274_v57 = vpop.eup %1273  ;;  %1287 = vpow2.f32 %v944_v39 }
  0xf4   :  { %1257 = vmatpush3.msra.mxu1 %v1614_v32  ;;  %1215 = vmatprep.subr.mxu0 %v1895_v8  ;;  %v1276_v9 = vpop.eup %1275  ;;  %v848_v45 = vadd.f32 1.0, %v1274_v57 }
  0xf5   :  { %1258 = vmatprep.subr.mxu1 %v1626_v40  ;;  %1216 = vmatpush3.msra.mxu0 %v1895_v8  ;;  %v871_v15 = vadd.f32 1.0, %v1276_v9  ;;  %v1278_v41 = vpop.eup %1277 }
  0xf6   :  { %1259 = vmatpush3.msra.mxu1 %v1626_v40  ;;  %1217 = vmatprep.subr.mxu0 %v1896_v12  ;;  %1289 = vrcp.f32 %v848_v45  ;;  %v847_v54 = vadd.f32 1.0, %v1278_v41 }
  0xf7   :  { %1261 = vmatmul.mubr.f32.vlgmr.msra.gmra.mxu1 %v1686_v10  ;;  %1218 = vmatpush3.msra.mxu0 %v1896_v12 }
  0xf8   :  { %1219 = vmatprep.subr.mxu0 %v1897_v13 }
  0xf9   :  { %1220 = vmatpush3.msra.mxu0 %v1897_v13  ;;  %v1280_v47 = vpop.eup %1279 }
  0xfa   :  { %1221 = vmatprep.subr.mxu0 %v1898_v14  ;;  %v894_v2 = vadd.f32 1.0, %v1280_v47 }
  0xfb   :  { %1222 = vmatpush3.msra.mxu0 %v1898_v14  ;;  %v1282_v58 = vpop.eup %1281 }
  0xfc   :  { %1223 = vmatprep.subr.mxu0 %v1899_v18  ;;  %v870_v43 = vadd.f32 1.0, %v1282_v58 }
  0xfd   :  { %1224 = vmatpush3.msra.mxu0 %v1899_v18 }
  0xfe   :  { %1226 = vmatmul.mubr.f32.vlgmr.msra.gmra.mxu0 %v1686_v10  ;;  %v1284_v10 = vpop.eup %1283 }
  0xff   :  { %v1286_v60 = vpop.eup %1285  ;;  %v113_v59 = vsub.f32 1.0, %v1284_v10 }
 0x100   :  { %v1288_v38 = vpop.eup %1287  ;;  %v112_v46 = vsub.f32 1.0, %v1286_v60 }
 0x101   :  { %v895_v8 = vadd.f32 1.0, %v1288_v38 }
 0x103   :  { %v1290_v50 = vpop.eup %1289 }
 0x174   :  { %v1122_v24 = vpop.f32.mrf.mxu1 }
 0x176   :  { %v380_v28 = vpop.f32.mrf.mxu1 }
 0x17c   :  { %v1087_v22 = vpop.f32.mrf.mxu0 }
 0x17d   :  { %v387_v30 = vadd.f32 %v1122_v24, %v1087_v22 }
 0x17e   :  { %v219_v25 = vpop.f32.mrf.mxu0 }
 0x17f   :  { %v381_v44 = vadd.f32 %v380_v28, %v219_v25 }
 0x195   :  { %v1192_v34 = vpop.f32.mrf.mxu1 }
 0x197   :  { %v586_v55 = vpop.f32.mrf.mxu1 }
 0x19d   :  { %v1157_v26 = vpop.f32.mrf.mxu0 }
 0x19e   :  { %v498_v48 = vadd.f32 %v1157_v26, %v387_v30 }
 0x19f   :  { %v490_v36 = vpop.f32.mrf.mxu0 }
 0x1a0   :  { %v491_v51 = vadd.f32 %v490_v36, %v381_v44  ;;  %v595_v62 = vadd.f32 %v1192_v34, %v498_v48 }
 0x1a2   :  { %v587_v32 = vadd.f32 %v586_v55, %v491_v51 }
 0x1b7   :  { %v1262_v5 = vpop.f32.mrf.mxu1 }
 0x1b9   :  { %v806_v11 = vpop.f32.mrf.mxu1 }
 0x1be   :  { %v1227_v6 = vpop.f32.mrf.mxu0 }
 0x1bf   :  { %v720_v17 = vadd.f32 %v1227_v6, %v595_v62 }
 0x1c0   :  { %v713_v40 = vpop.f32.mrf.mxu0 }
 0x1c1   :  { %v813_v53 = vadd.f32 %v1262_v5, %v720_v17  ;;  %v714_v0 = vadd.f32 %v713_v40, %v587_v32 }
 0x1c3   :  { %v818_v16 = vmul.f32 1.442695, %v813_v53  ;;  %v807_v33 = vadd.f32 %v806_v11, %v714_v0 }
 0x1c5   :  { %1291 = vpow2.f32 %v818_v16  ;;  %v816_v35 = vmul.f32 1.442695, %v807_v33 }
 0x1c6   :  { %1293 = vrcp.f32 %v871_v15 }
 0x1c7   :  { %1295 = vpow2.f32 %v816_v35 }
 0x1c8   :  { %1297 = vrcp.f32 %v847_v54 }
 0x1c9   :  { %1299 = vrcp.f32 %v894_v2 }
 0x1ca   :  { %1301 = vrcp.f32 %v870_v43 }
 0x1cb   :  { %1303 = vrcp.f32 %v895_v8 }
 0x1d2   :  { %v1292_v1 = vpop.eup %1291 }
 0x1d3   :  { %v1294_v42 = vpop.eup %1293  ;;  %v821_v7 = vmul.f32 %v1292_v1, %v113_v59 }
 0x1d4   :  { %v1296_v12 = vpop.eup %1295 }
 0x1d5   :  { %826 = vadd.xlane.f32.xlu0 %v821_v7  ;;  %823 = vst [vmem:[#allocation8 + $0x8] sm:$0xff] %v821_v7  ;;  %v854_v13 = vmul.f32 %v1290_v50, %v821_v7  ;;  %v820_v14 = vmul.f32 %v1296_v12, %v112_v46  ;;  %v877_v18 = vmul.f32 %v1294_v42, %v821_v7  ;;  %v1298_v20 = vpop.eup %1297 }
 0x1d6   :  { %v832_v19 = vmul.f32 %v821_v7, %v1471_v3  ;;  %v1300_v22 = vpop.eup %1299 }
 0x1d7   :  { %857 = vadd.xlane.f32.xlu1 %v854_v13  ;;  %822 = vst [vmem:[#allocation8] sm:$0xff] %v820_v14  ;;  %v831_v21 = vmul.f32 %v820_v14, %v1476_v4  ;;  %v853_v23 = vmul.f32 %v1298_v20, %v820_v14  ;;  %v1302_v24 = vpop.eup %1301  ;;  %v900_v25 = vmul.f32 %v1300_v22, %v820_v14 }
 0x1d8   :  { %v876_v26 = vmul.f32 %v1302_v24, %v820_v14  ;;  %v1304_v27 = vpop.eup %1303 }
 0x1d9   :  { %880 = vadd.xlane.f32.xlu0 %v877_v18  ;;  %v901_v28 = vmul.f32 %v1304_v27, %v821_v7 }
 0x1db   :  { %824 = vadd.xlane.f32.xlu1 %v820_v14 }
 0x1dd   :  { %835 = vadd.xlane.f32.xlu0 %v832_v19 }
 0x1df   :  { %833 = vadd.xlane.f32.xlu1 %v831_v21 }
 0x1e1   :  { %855 = vadd.xlane.f32.xlu0 %v853_v23 }
 0x1e3   :  { %902 = vadd.xlane.f32.xlu1 %v900_v25 }
 0x1e5   :  { %878 = vadd.xlane.f32.xlu0 %v876_v26 }
 0x1e9   :  { %904 = vadd.xlane.f32.xlu0 %v901_v28 }
 0x1ea   :  { %1376 = shalt.err (!%p1373_p5)
}
 0x1eb   :  { %926 = dma.vmem_to_hbm [thread:$0]  %s921_s27, 256, %s1875_s8, [#allocation4], %s1393_s10, %s1393_s10, %s1394_s11   ;;  %vm828_vm2 = vcmask 7168   ;;  %vm882_vm3 = vcmask 15368   ;;  %vm906_vm4 = vcmask 23568  }
 0x25e   :  { %v827_v3 = vpop.xlane.xlu0 %826 }
 0x25f   :  { %830 = vst.msk [vmem:[%s1874_s7 + $0x8] sm:$0xff] %vm828_vm2, %v827_v3 }
 0x260   :  { %v858_v4 = vpop.xlane.xlu1 %857 }
 0x261   :  { %860 = vst.msk [vmem:[%s1872_s5 + $0x8] sm:$0xff] %vm828_vm2, %v858_v4 }
 0x262   :  { %v881_v29 = vpop.xlane.xlu0 %880 }
 0x263   :  { %884 = vst.msk [vmem:[%s1872_s5 + $0x8] sm:$0xff] %vm882_vm3, %v881_v29 }
 0x264   :  { %v825_v30 = vpop.xlane.xlu1 %824 }
 0x265   :  { %829 = vst.msk [vmem:[%s1874_s7] sm:$0xff] %vm828_vm2, %v825_v30 }
 0x266   :  { %v836_v31 = vpop.xlane.xlu0 %835 }
 0x267   :  { %838 = vst.msk [vmem:[%s1873_s6 + $0x8] sm:$0xff] %vm828_vm2, %v836_v31 }
 0x268   :  { %v834_v34 = vpop.xlane.xlu1 %833 }
 0x269   :  { %837 = vst.msk [vmem:[%s1873_s6] sm:$0xff] %vm828_vm2, %v834_v34 }
 0x26a   :  { %v856_v36 = vpop.xlane.xlu0 %855 }
 0x26b   :  { %859 = vst.msk [vmem:[%s1872_s5] sm:$0xff] %vm828_vm2, %v856_v36 }
 0x26c   :  { %v903_v44 = vpop.xlane.xlu1 %902 }
 0x26e   :  { %v879_v37 = vpop.xlane.xlu0 %878 }
 0x26f   :  { %883 = vst.msk [vmem:[%s1872_s5] sm:$0xff] %vm882_vm3, %v879_v37 }
 0x270   :  { %907 = vst.msk [vmem:[%s1872_s5] sm:$0xff] %vm906_vm4, %v903_v44 }
 0x272   :  { %v905_v48 = vpop.xlane.xlu0 %904 }
 0x273   :  { %908 = vst.msk [vmem:[%s1872_s5 + $0x8] sm:$0xff] %vm906_vm4, %v905_v48 }
 0x274   :  { %1389 = dma.done.wait [#allocation4], 256  }
 0x275   :  { %1390 = vsyncadd [#allocation4], 4294967040 }
 0x276   :  { %936 = vsyncpa [#allocation3], 1 }
 0x277   :  { %937 = vsyncpa [#allocation6], 1 }
 0x278   :  { %938 = vsyncpa [#allocation4], 1 }

</bundles_post_ra>
